<compile_context>
chip_gen: v5e
topology: v5e:2x2
jax: 0.10.0
libtpu: 0.0.40
codegen_flags: <defaults>
</compile_context>

<pallas_src>
import numpy as np
import jax
import jax.numpy as jnp
from jax.experimental import pallas as pl
from jax.experimental.pallas import tpu as pltpu


# ----------------------------- host-side helpers -----------------------------

def bilinear_matrix(in_size: int, scale: float) -> np.ndarray:
    """PyTorch F.interpolate(mode='bilinear', align_corners=False) as a matrix."""
    out_size = int(np.floor(in_size * scale))
    P = np.zeros((out_size, in_size), dtype=np.float32)
    for d in range(out_size):
        src = (d + 0.5) / scale - 0.5
        src = max(src, 0.0)
        i0 = min(int(np.floor(src)), in_size - 1)
        i1 = min(i0 + 1, in_size - 1)
        w1 = src - i0
        P[d, i0] += 1.0 - w1
        P[d, i1] += w1
    return P


def dft_matrices(n: int):
    """Ortho-normalized DFT matrix split into real / imag parts (symmetric)."""
    k = np.arange(n)
    ang = -2.0 * np.pi * np.outer(k, k) / n
    fr = (np.cos(ang) / np.sqrt(n)).astype(np.float32)
    fi = (np.sin(ang) / np.sqrt(n)).astype(np.float32)
    return fr, fi


# --------------------------------- kernel ------------------------------------

def _make_kernel(scale_meta, k_groups, chunk):
    """scale_meta: static list of (loss_weight, hs_pad, half_lane_split)."""
    n_ops = 3 * len(scale_meta)

    def kernel(*refs):
        z_ref = refs[0]                       # (H, k_groups*chunk) bf16 packed x|y images
        op_refs = refs[1:1 + n_ops]           # per scale: [Lr;Li], [Rr;-Ri], [Ri;Rr]
        out_ref = refs[1 + n_ops]             # (1,1,1) f32 per-step partial SSE

        total = jnp.float32(0.0)
        for s, (w_s, hs_pad, half) in enumerate(scale_meta):
            lri = op_refs[3 * s][...]         # (2*hs_pad, H)   folded resize + row DFT
            ncr = op_refs[3 * s + 1][...]     # (2*chunk, C)    block-diag col op (real out)
            nci = op_refs[3 * s + 2][...]     # (2*chunk, C)    block-diag col op (imag out)
            for c in range(k_groups):         # static unroll over image groups in the block
                z = z_ref[:, c * chunk:(c + 1) * chunk]
                # fused row pass: one dot gives [Lr@z ; Li@z] (sublane-aligned halves)
                ab = jnp.dot(lri, z, preferred_element_type=jnp.float32)
                a = ab[:hs_pad].astype(jnp.bfloat16)
                b = ab[hs_pad:].astype(jnp.bfloat16)
                ab_l = jnp.concatenate([a, b], axis=1)          # (hs_pad, 2*chunk)
                # fused complex column pass: 2 dots total
                yr = jnp.dot(ab_l, ncr, preferred_element_type=jnp.float32)
                yi = jnp.dot(ab_l, nci, preferred_element_type=jnp.float32)
                amp = jnp.sqrt(yr * yr + yi * yi)               # (hs_pad, B2*Wh)
                # first B*Wh lanes = input amplitudes, last B*Wh = target
                d = amp[:, :half] - amp[:, half:]
                total = total + jnp.float32(w_s) * jnp.sum(d * d)
        out_ref[...] = total + jnp.zeros_like(out_ref)

    return kernel


# --------------------------------- wrapper ------------------------------------

def l_fft_multiscale(inp, tgt, scales=(1.0, 0.5, 0.25)):
    """Pallas implementation of L_fft_multiscale.forward(input, target)."""
    n, c, H, W = inp.shape
    nc = n * c
    x = inp.reshape(nc, H, W).astype(jnp.float32)
    y = tgt.reshape(nc, H, W).astype(jnp.float32)

    # --- lane-friendly per-image width (zero-pad W; padding contributes 0) ---
    if W <= 128:
        W_p = 1
        while W_p < W:
            W_p *= 2
        B = 128 // W_p
    else:
        W_p = -(-W // 128) * 128
        B = 1

    G = -(-nc // B)
    # v7x: make the "parallel" grid axis splittable across both TensorCores
    while G < 2 and B > 1 and (B * W_p) % 128 == 0:
        B //= 2
        G = -(-nc // B)
    B2 = 2 * B
    chunk = B2 * W_p                      # lanes per image group (x images | y images)

    # image groups per grid step (amortize pipeline overhead), keep >= 2 steps
    k = min(8, G // 2) if G >= 4 else 1
    G2 = -(-G // k)                       # grid size
    Gtot = G2 * k

    if W_p > W:
        x = jnp.pad(x, ((0, 0), (0, 0), (0, W_p - W)))
        y = jnp.pad(y, ((0, 0), (0, 0), (0, W_p - W)))
    pad = Gtot * B - nc
    if pad:                               # zero images contribute zero loss
        zeros = jnp.zeros((pad, H, W_p), jnp.float32)
        x = jnp.concatenate([x, zeros], axis=0)
        y = jnp.concatenate([y, zeros], axis=0)

    # pack: per group B inputs then B targets along lanes -> (H, Gtot*chunk)
    grp = jnp.concatenate([x.reshape(Gtot, B, H, W_p),
                           y.reshape(Gtot, B, H, W_p)], axis=1)
    zp = jnp.transpose(grp, (2, 0, 1, 3)).reshape(H, Gtot * chunk).astype(jnp.bfloat16)

    # --- folded, fused operators per scale (bf16) ---
    ops = []
    scale_meta = []
    eye = np.eye(B2, dtype=np.float32)
    for s in scales:
        ph = bilinear_matrix(H, s)                        # (Hs, H)
        pw = bilinear_matrix(W, s)                        # (Ws, W)
        hs, ws = ph.shape[0], pw.shape[0]
        hs_pad = -(-hs // 8) * 8                          # sublane-align the row halves
        frh, fih = dft_matrices(hs)
        frw, fiw = dft_matrices(ws)

        # row side: resize folded into DFT, [Lr; Li] stacked (zero rows are harmless)
        lr = np.zeros((hs_pad, H), np.float32); lr[:hs] = frh @ ph
        li = np.zeros((hs_pad, H), np.float32); li[:hs] = fih @ ph
        lri = np.vstack([lr, li])                         # (2*hs_pad, H)

        # column side: Hermitian half (real input), sqrt(2) on non-self-conjugate cols
        wh = ws // 2 + 1
        colw = np.full((wh,), np.sqrt(2.0), dtype=np.float32)
        colw[0] = 1.0
        if ws % 2 == 0:
            colw[-1] = 1.0
        rr = pw.T @ (frw[:, :wh] * colw)                  # (W, wh)
        ri = pw.T @ (fiw[:, :wh] * colw)
        rrp = np.zeros((W_p, wh), np.float32); rrp[:W] = rr
        rip = np.zeros((W_p, wh), np.float32); rip[:W] = ri
        krr = np.kron(eye, rrp)                           # (chunk, B2*wh)
        kri = np.kron(eye, rip)
        ncr = np.vstack([krr, -kri])                      # yr = [a|b] @ ncr
        nci = np.vstack([kri, krr])                       # yi = [a|b] @ nci

        ops += [jnp.asarray(lri, jnp.bfloat16),
                jnp.asarray(ncr, jnp.bfloat16),
                jnp.asarray(nci, jnp.bfloat16)]
        # F.mse_loss averages over nc*Hs*Ws (full grid; Hermitian weights restore it)
        scale_meta.append((1.0 / (nc * hs * ws), hs_pad, B * wh))

    in_specs = [pl.BlockSpec((H, k * chunk), lambda j: (0, j))]
    in_specs += [pl.BlockSpec(op.shape, lambda j: (0, 0)) for op in ops]

    # tight-but-safe VMEM request (v7x only has 64 MiB)
    op_bytes = sum(int(np.prod(op.shape)) * 2 for op in ops)
    z_bytes = H * k * chunk * 2
    vmem_limit = int(min(48 << 20, max(8 << 20, 4 * (op_bytes + z_bytes))))

    partials = pl.pallas_call(
        _make_kernel(tuple(scale_meta), k, chunk),
        out_shape=jax.ShapeDtypeStruct((G2, 1, 1), jnp.float32),
        grid_spec=pltpu.PrefetchScalarGridSpec(
            num_scalar_prefetch=0,
            grid=(G2,),
            in_specs=in_specs,
            out_specs=pl.BlockSpec((1, 1, 1), lambda j: (j, 0, 0)),
        ),
        compiler_params=pltpu.CompilerParams(
            dimension_semantics=("parallel",),
            vmem_limit_bytes=vmem_limit),
    )(zp, *ops)
    return jnp.sum(partials)


# ------------------------------ pure-JAX reference ----------------------------

def _reference_loss(inp, tgt):
    n, c, H, W = inp.shape
    loss = jnp.float32(0.0)
    for scale in (1.0, 0.5, 0.25):
        ph = jnp.asarray(bilinear_matrix(H, scale))
        pw = jnp.asarray(bilinear_matrix(W, scale))
        xs = jnp.einsum('ah,nchw,bw->ncab', ph, inp, pw)
        ys = jnp.einsum('ah,nchw,bw->ncab', ph, tgt, pw)
        xa = jnp.abs(jnp.fft.fft2(xs, norm='ortho'))
        ya = jnp.abs(jnp.fft.fft2(ys, norm='ortho'))
        loss = loss + jnp.mean((xa - ya) ** 2)
    return loss


# ----------------------------------- main -------------------------------------

if __name__ == "__main__":
    key = jax.random.PRNGKey(0)
    k1, k2 = jax.random.split(key)
    # NCHW, same convention as the PyTorch module
    inp = jax.random.normal(k1, (2, 4, 16, 16), dtype=jnp.float32)
    tgt = jax.random.normal(k2, (2, 4, 16, 16), dtype=jnp.float32)

    loss_fn = jax.jit(l_fft_multiscale)
    loss = jax.block_until_ready(loss_fn(inp, tgt))
    ref = jax.block_until_ready(_reference_loss(inp, tgt))

    # loose tolerance: bf16 MXU operands (== DEFAULT precision rounding) vs XLA FFT
    np.testing.assert_allclose(np.asarray(loss), np.asarray(ref),
                               rtol=1e-1, atol=1e-3)
    print("KERNEL_OK")
</pallas_src>

<mosaic_0001>
module attributes {stable_mosaic.version = 11 : i64} {
  func.func @kernel(%arg0: i32, %arg1: memref<16x128xbf16, #tpu.memory_space<vmem>>, %arg2: memref<32x16xbf16, #tpu.memory_space<vmem>>, %arg3: memref<256x72xbf16, #tpu.memory_space<vmem>>, %arg4: memref<256x72xbf16, #tpu.memory_space<vmem>>, %arg5: memref<16x16xbf16, #tpu.memory_space<vmem>>, %arg6: memref<256x40xbf16, #tpu.memory_space<vmem>>, %arg7: memref<256x40xbf16, #tpu.memory_space<vmem>>, %arg8: memref<16x16xbf16, #tpu.memory_space<vmem>>, %arg9: memref<256x24xbf16, #tpu.memory_space<vmem>>, %arg10: memref<256x24xbf16, #tpu.memory_space<vmem>>, %arg11: memref<1x1x1xf32, #tpu.memory_space<vmem>>) attributes {dimension_semantics = [#tpu.dimension_semantics<parallel>], iteration_bounds = array<i64: 2>, scalar_prefetch = 0 : i64, scratch_operands = 0 : i64, tpu.core_type = #tpu.core_type<tc>, window_params = [{transform_indices = @transform_0, window_bounds = array<i64: 16, 128>}, {pipeline_mode = #tpu.pipeline_mode<synchronous>, transform_indices = @transform_1, window_bounds = array<i64: 32, 16>}, {pipeline_mode = #tpu.pipeline_mode<synchronous>, transform_indices = @transform_2, window_bounds = array<i64: 256, 72>}, {pipeline_mode = #tpu.pipeline_mode<synchronous>, transform_indices = @transform_3, window_bounds = array<i64: 256, 72>}, {pipeline_mode = #tpu.pipeline_mode<synchronous>, transform_indices = @transform_4, window_bounds = array<i64: 16, 16>}, {pipeline_mode = #tpu.pipeline_mode<synchronous>, transform_indices = @transform_5, window_bounds = array<i64: 256, 40>}, {pipeline_mode = #tpu.pipeline_mode<synchronous>, transform_indices = @transform_6, window_bounds = array<i64: 256, 40>}, {pipeline_mode = #tpu.pipeline_mode<synchronous>, transform_indices = @transform_7, window_bounds = array<i64: 16, 16>}, {pipeline_mode = #tpu.pipeline_mode<synchronous>, transform_indices = @transform_8, window_bounds = array<i64: 256, 24>}, {pipeline_mode = #tpu.pipeline_mode<synchronous>, transform_indices = @transform_9, window_bounds = array<i64: 256, 24>}, {transform_indices = @transform_10, window_bounds = array<i64: 1, 1, 1>}]} {
    %c0 = arith.constant 0 : index
    %c0_0 = arith.constant 0 : index
    %0 = vector.load %arg2[%c0, %c0_0] : memref<32x16xbf16, #tpu.memory_space<vmem>>, vector<32x16xbf16>
    %c0_1 = arith.constant 0 : index
    %c0_2 = arith.constant 0 : index
    %1 = vector.load %arg3[%c0_1, %c0_2] : memref<256x72xbf16, #tpu.memory_space<vmem>>, vector<256x72xbf16>
    %c0_3 = arith.constant 0 : index
    %c0_4 = arith.constant 0 : index
    %2 = vector.load %arg4[%c0_3, %c0_4] : memref<256x72xbf16, #tpu.memory_space<vmem>>, vector<256x72xbf16>
    %c0_5 = arith.constant 0 : index
    %c0_6 = arith.constant 0 : index
    %3 = vector.load %arg1[%c0_5, %c0_6] : memref<16x128xbf16, #tpu.memory_space<vmem>>, vector<16x128xbf16>
    %cst = arith.constant dense<0.000000e+00> : vector<32x128xf32>
    %4 = tpu.matmul %0, %3, %cst {dimension_numbers = #tpu.dot_dimension_numbers<[1], [0], [0], [1], [0, 0, 1, 1], [], []>} : vector<32x16xbf16>, vector<16x128xbf16>, vector<32x128xf32> -> vector<32x128xf32>
    %5 = vector.extract_strided_slice %4 {offsets = [0, 0], sizes = [16, 128], strides = [1, 1]} : vector<32x128xf32> to vector<16x128xf32>
    %6 = arith.truncf %5 : vector<16x128xf32> to vector<16x128xbf16>
    %7 = vector.extract_strided_slice %4 {offsets = [16, 0], sizes = [16, 128], strides = [1, 1]} : vector<32x128xf32> to vector<16x128xf32>
    %8 = arith.truncf %7 : vector<16x128xf32> to vector<16x128xbf16>
    %9 = tpu.concatenate %6, %8 in 1 : vector<16x128xbf16>, vector<16x128xbf16> -> vector<16x256xbf16>
    %cst_7 = arith.constant dense<0.000000e+00> : vector<16x72xf32>
    %10 = tpu.matmul %9, %1, %cst_7 {dimension_numbers = #tpu.dot_dimension_numbers<[1], [0], [0], [1], [0, 0, 1, 1], [], []>} : vector<16x256xbf16>, vector<256x72xbf16>, vector<16x72xf32> -> vector<16x72xf32>
    %cst_8 = arith.constant dense<0.000000e+00> : vector<16x72xf32>
    %11 = tpu.matmul %9, %2, %cst_8 {dimension_numbers = #tpu.dot_dimension_numbers<[1], [0], [0], [1], [0, 0, 1, 1], [], []>} : vector<16x256xbf16>, vector<256x72xbf16>, vector<16x72xf32> -> vector<16x72xf32>
    %12 = arith.mulf %10, %10 : vector<16x72xf32>
    %13 = arith.mulf %11, %11 : vector<16x72xf32>
    %14 = arith.addf %12, %13 : vector<16x72xf32>
    %15 = math.sqrt %14 : vector<16x72xf32>
    %16 = vector.extract_strided_slice %15 {offsets = [0, 0], sizes = [16, 36], strides = [1, 1]} : vector<16x72xf32> to vector<16x36xf32>
    %17 = vector.extract_strided_slice %15 {offsets = [0, 36], sizes = [16, 36], strides = [1, 1]} : vector<16x72xf32> to vector<16x36xf32>
    %18 = arith.subf %16, %17 : vector<16x36xf32>
    %19 = arith.mulf %18, %18 : vector<16x36xf32>
    %20 = vector.shape_cast %19 : vector<16x36xf32> to vector<1x16x36xf32>
    %cst_9 = arith.constant dense<0.000000e+00> : vector<1xf32>
    %21 = vector.multi_reduction <add>, %20, %cst_9 [1, 2] : vector<1x16x36xf32> to vector<1xf32>
    %22 = vector.shape_cast %21 : vector<1xf32> to vector<1x1x1xf32>
    %23 = vector.extract %22[0, 0, 0] : f32 from vector<1x1x1xf32>
    %cst_10 = arith.constant 4.8828125E-4 : f32
    %24 = arith.mulf %cst_10, %23 : f32
    %cst_11 = arith.constant 0.000000e+00 : f32
    %25 = arith.addf %cst_11, %24 : f32
    %c0_12 = arith.constant 0 : index
    %c0_13 = arith.constant 0 : index
    %26 = vector.load %arg5[%c0_12, %c0_13] : memref<16x16xbf16, #tpu.memory_space<vmem>>, vector<16x16xbf16>
    %c0_14 = arith.constant 0 : index
    %c0_15 = arith.constant 0 : index
    %27 = vector.load %arg6[%c0_14, %c0_15] : memref<256x40xbf16, #tpu.memory_space<vmem>>, vector<256x40xbf16>
    %c0_16 = arith.constant 0 : index
    %c0_17 = arith.constant 0 : index
    %28 = vector.load %arg7[%c0_16, %c0_17] : memref<256x40xbf16, #tpu.memory_space<vmem>>, vector<256x40xbf16>
    %c0_18 = arith.constant 0 : index
    %c0_19 = arith.constant 0 : index
    %29 = vector.load %arg1[%c0_18, %c0_19] : memref<16x128xbf16, #tpu.memory_space<vmem>>, vector<16x128xbf16>
    %cst_20 = arith.constant dense<0.000000e+00> : vector<16x128xf32>
    %30 = tpu.matmul %26, %29, %cst_20 {dimension_numbers = #tpu.dot_dimension_numbers<[1], [0], [0], [1], [0, 0, 1, 1], [], []>} : vector<16x16xbf16>, vector<16x128xbf16>, vector<16x128xf32> -> vector<16x128xf32>
    %31 = vector.extract_strided_slice %30 {offsets = [0, 0], sizes = [8, 128], strides = [1, 1]} : vector<16x128xf32> to vector<8x128xf32>
    %32 = arith.truncf %31 : vector<8x128xf32> to vector<8x128xbf16>
    %33 = vector.extract_strided_slice %30 {offsets = [8, 0], sizes = [8, 128], strides = [1, 1]} : vector<16x128xf32> to vector<8x128xf32>
    %34 = arith.truncf %33 : vector<8x128xf32> to vector<8x128xbf16>
    %35 = tpu.concatenate %32, %34 in 1 : vector<8x128xbf16>, vector<8x128xbf16> -> vector<8x256xbf16>
    %cst_21 = arith.constant dense<0.000000e+00> : vector<8x40xf32>
    %36 = tpu.matmul %35, %27, %cst_21 {dimension_numbers = #tpu.dot_dimension_numbers<[1], [0], [0], [1], [0, 0, 1, 1], [], []>} : vector<8x256xbf16>, vector<256x40xbf16>, vector<8x40xf32> -> vector<8x40xf32>
    %cst_22 = arith.constant dense<0.000000e+00> : vector<8x40xf32>
    %37 = tpu.matmul %35, %28, %cst_22 {dimension_numbers = #tpu.dot_dimension_numbers<[1], [0], [0], [1], [0, 0, 1, 1], [], []>} : vector<8x256xbf16>, vector<256x40xbf16>, vector<8x40xf32> -> vector<8x40xf32>
    %38 = arith.mulf %36, %36 : vector<8x40xf32>
    %39 = arith.mulf %37, %37 : vector<8x40xf32>
    %40 = arith.addf %38, %39 : vector<8x40xf32>
    %41 = math.sqrt %40 : vector<8x40xf32>
    %42 = vector.extract_strided_slice %41 {offsets = [0, 0], sizes = [8, 20], strides = [1, 1]} : vector<8x40xf32> to vector<8x20xf32>
    %43 = vector.extract_strided_slice %41 {offsets = [0, 20], sizes = [8, 20], strides = [1, 1]} : vector<8x40xf32> to vector<8x20xf32>
    %44 = arith.subf %42, %43 : vector<8x20xf32>
    %45 = arith.mulf %44, %44 : vector<8x20xf32>
    %46 = vector.shape_cast %45 : vector<8x20xf32> to vector<1x8x20xf32>
    %cst_23 = arith.constant dense<0.000000e+00> : vector<1xf32>
    %47 = vector.multi_reduction <add>, %46, %cst_23 [1, 2] : vector<1x8x20xf32> to vector<1xf32>
    %48 = vector.shape_cast %47 : vector<1xf32> to vector<1x1x1xf32>
    %49 = vector.extract %48[0, 0, 0] : f32 from vector<1x1x1xf32>
    %cst_24 = arith.constant 0.001953125 : f32
    %50 = arith.mulf %cst_24, %49 : f32
    %51 = arith.addf %25, %50 : f32
    %c0_25 = arith.constant 0 : index
    %c0_26 = arith.constant 0 : index
    %52 = vector.load %arg8[%c0_25, %c0_26] : memref<16x16xbf16, #tpu.memory_space<vmem>>, vector<16x16xbf16>
    %c0_27 = arith.constant 0 : index
    %c0_28 = arith.constant 0 : index
    %53 = vector.load %arg9[%c0_27, %c0_28] : memref<256x24xbf16, #tpu.memory_space<vmem>>, vector<256x24xbf16>
    %c0_29 = arith.constant 0 : index
    %c0_30 = arith.constant 0 : index
    %54 = vector.load %arg10[%c0_29, %c0_30] : memref<256x24xbf16, #tpu.memory_space<vmem>>, vector<256x24xbf16>
    %c0_31 = arith.constant 0 : index
    %c0_32 = arith.constant 0 : index
    %55 = vector.load %arg1[%c0_31, %c0_32] : memref<16x128xbf16, #tpu.memory_space<vmem>>, vector<16x128xbf16>
    %cst_33 = arith.constant dense<0.000000e+00> : vector<16x128xf32>
    %56 = tpu.matmul %52, %55, %cst_33 {dimension_numbers = #tpu.dot_dimension_numbers<[1], [0], [0], [1], [0, 0, 1, 1], [], []>} : vector<16x16xbf16>, vector<16x128xbf16>, vector<16x128xf32> -> vector<16x128xf32>
    %57 = vector.extract_strided_slice %56 {offsets = [0, 0], sizes = [8, 128], strides = [1, 1]} : vector<16x128xf32> to vector<8x128xf32>
    %58 = arith.truncf %57 : vector<8x128xf32> to vector<8x128xbf16>
    %59 = vector.extract_strided_slice %56 {offsets = [8, 0], sizes = [8, 128], strides = [1, 1]} : vector<16x128xf32> to vector<8x128xf32>
    %60 = arith.truncf %59 : vector<8x128xf32> to vector<8x128xbf16>
    %61 = tpu.concatenate %58, %60 in 1 : vector<8x128xbf16>, vector<8x128xbf16> -> vector<8x256xbf16>
    %cst_34 = arith.constant dense<0.000000e+00> : vector<8x24xf32>
    %62 = tpu.matmul %61, %53, %cst_34 {dimension_numbers = #tpu.dot_dimension_numbers<[1], [0], [0], [1], [0, 0, 1, 1], [], []>} : vector<8x256xbf16>, vector<256x24xbf16>, vector<8x24xf32> -> vector<8x24xf32>
    %cst_35 = arith.constant dense<0.000000e+00> : vector<8x24xf32>
    %63 = tpu.matmul %61, %54, %cst_35 {dimension_numbers = #tpu.dot_dimension_numbers<[1], [0], [0], [1], [0, 0, 1, 1], [], []>} : vector<8x256xbf16>, vector<256x24xbf16>, vector<8x24xf32> -> vector<8x24xf32>
    %64 = arith.mulf %62, %62 : vector<8x24xf32>
    %65 = arith.mulf %63, %63 : vector<8x24xf32>
    %66 = arith.addf %64, %65 : vector<8x24xf32>
    %67 = math.sqrt %66 : vector<8x24xf32>
    %68 = vector.extract_strided_slice %67 {offsets = [0, 0], sizes = [8, 12], strides = [1, 1]} : vector<8x24xf32> to vector<8x12xf32>
    %69 = vector.extract_strided_slice %67 {offsets = [0, 12], sizes = [8, 12], strides = [1, 1]} : vector<8x24xf32> to vector<8x12xf32>
    %70 = arith.subf %68, %69 : vector<8x12xf32>
    %71 = arith.mulf %70, %70 : vector<8x12xf32>
    %72 = vector.shape_cast %71 : vector<8x12xf32> to vector<1x8x12xf32>
    %cst_36 = arith.constant dense<0.000000e+00> : vector<1xf32>
    %73 = vector.multi_reduction <add>, %72, %cst_36 [1, 2] : vector<1x8x12xf32> to vector<1xf32>
    %74 = vector.shape_cast %73 : vector<1xf32> to vector<1x1x1xf32>
    %75 = vector.extract %74[0, 0, 0] : f32 from vector<1x1x1xf32>
    %cst_37 = arith.constant 7.812500e-03 : f32
    %76 = arith.mulf %cst_37, %75 : f32
    %77 = arith.addf %51, %76 : f32
    %cst_38 = arith.constant 0.000000e+00 : f32
    %78 = vector.broadcast %cst_38 : f32 to vector<1x1x1xf32>
    %79 = vector.broadcast %77 : f32 to vector<1x1x1xf32>
    %80 = arith.addf %79, %78 : vector<1x1x1xf32>
    %c0_39 = arith.constant 0 : index
    %c0_40 = arith.constant 0 : index
    %c0_41 = arith.constant 0 : index
    %81 = vector.load %arg11[%c0_39, %c0_40, %c0_41] : memref<1x1x1xf32, #tpu.memory_space<vmem>>, vector<1x1x1xf32>
    tpu.vector_store %arg11[%c0_39, %c0_40, %c0_41], %80 {strides = array<i32>} : memref<1x1x1xf32, #tpu.memory_space<vmem>>, vector<1x1x1xf32>,
    return
  }
  func.func @transform_0(%arg0: i32) -> (i32, i32) {
    %c0_i32 = arith.constant 0 : i32
    %c0_i32_0 = arith.constant 0 : i32
    return %c0_i32, %arg0 : i32, i32
  }
  func.func @transform_1(%arg0: i32) -> (i32, i32) {
    %c0_i32 = arith.constant 0 : i32
    %c0_i32_0 = arith.constant 0 : i32
    %c0_i32_1 = arith.constant 0 : i32
    return %c0_i32, %c0_i32_0 : i32, i32
  }
  func.func @transform_2(%arg0: i32) -> (i32, i32) {
    %c0_i32 = arith.constant 0 : i32
    %c0_i32_0 = arith.constant 0 : i32
    %c0_i32_1 = arith.constant 0 : i32
    return %c0_i32, %c0_i32_0 : i32, i32
  }
  func.func @transform_3(%arg0: i32) -> (i32, i32) {
    %c0_i32 = arith.constant 0 : i32
    %c0_i32_0 = arith.constant 0 : i32
    %c0_i32_1 = arith.constant 0 : i32
    return %c0_i32, %c0_i32_0 : i32, i32
  }
  func.func @transform_4(%arg0: i32) -> (i32, i32) {
    %c0_i32 = arith.constant 0 : i32
    %c0_i32_0 = arith.constant 0 : i32
    %c0_i32_1 = arith.constant 0 : i32
    return %c0_i32, %c0_i32_0 : i32, i32
  }
  func.func @transform_5(%arg0: i32) -> (i32, i32) {
    %c0_i32 = arith.constant 0 : i32
    %c0_i32_0 = arith.constant 0 : i32
    %c0_i32_1 = arith.constant 0 : i32
    return %c0_i32, %c0_i32_0 : i32, i32
  }
  func.func @transform_6(%arg0: i32) -> (i32, i32) {
    %c0_i32 = arith.constant 0 : i32
    %c0_i32_0 = arith.constant 0 : i32
    %c0_i32_1 = arith.constant 0 : i32
    return %c0_i32, %c0_i32_0 : i32, i32
  }
  func.func @transform_7(%arg0: i32) -> (i32, i32) {
    %c0_i32 = arith.constant 0 : i32
    %c0_i32_0 = arith.constant 0 : i32
    %c0_i32_1 = arith.constant 0 : i32
    return %c0_i32, %c0_i32_0 : i32, i32
  }
  func.func @transform_8(%arg0: i32) -> (i32, i32) {
    %c0_i32 = arith.constant 0 : i32
    %c0_i32_0 = arith.constant 0 : i32
    %c0_i32_1 = arith.constant 0 : i32
    return %c0_i32, %c0_i32_0 : i32, i32
  }
  func.func @transform_9(%arg0: i32) -> (i32, i32) {
    %c0_i32 = arith.constant 0 : i32
    %c0_i32_0 = arith.constant 0 : i32
    %c0_i32_1 = arith.constant 0 : i32
    return %c0_i32, %c0_i32_0 : i32, i32
  }
  func.func @transform_10(%arg0: i32) -> (i32, i32, i32) {
    %c0_i32 = arith.constant 0 : i32
    %c0_i32_0 = arith.constant 0 : i32
    %c0_i32_1 = arith.constant 0 : i32
    return %arg0, %c0_i32, %c0_i32_0 : i32, i32, i32
  }
}

</mosaic_0001>

<bundles_post_ra>
// kernel: l_fft_multiscale.1
= control target key start
LH: loop header
LB: loop body
LE: loop exit
PB: predicated region body
PF: predicated region fallthrough
CT: control target
= control target key end

     0   :  { %s2272_s13 = smov 0   ;;  %s2274_s14 = smov 0   ;;  %s2643_s0 = inlined_call_operand.vmem [shape: bf16[16,256], index: 0, kind: input, shape index: {}]   ;;  %s2644_s1 = inlined_call_operand.vmem [shape: bf16[32,16], index: 1, kind: input, shape index: {}]   ;;  %s2645_s2 = inlined_call_operand.vmem [shape: bf16[256,72], index: 2, kind: input, shape index: {}]   ;;  %s2646_s3 = inlined_call_operand.vmem [shape: bf16[256,72], index: 3, kind: input, shape index: {}]   ;;  %s2647_s4 = inlined_call_operand.vmem [shape: bf16[16,16], index: 4, kind: input, shape index: {}]   ;;  %s2648_s5 = inlined_call_operand.vmem [shape: bf16[256,40], index: 5, kind: input, shape index: {}]   ;;  %s2649_s6 = inlined_call_operand.vmem [shape: bf16[256,40], index: 6, kind: input, shape index: {}]   ;;  %s2650_s7 = inlined_call_operand.vmem [shape: bf16[16,16], index: 7, kind: input, shape index: {}]   ;;  %s2651_s8 = inlined_call_operand.vmem [shape: bf16[256,24], index: 8, kind: input, shape index: {}]   ;;  %s2652_s9 = inlined_call_operand.vmem [shape: bf16[256,24], index: 9, kind: input, shape index: {}]   ;;  %s2653_s10 = inlined_call_operand.vmem [shape: f32[2,1,1], index: 10, kind: output, shape index: {}]  }
   0x1   :  { %s2276_s15 = smov 0  }
   0x2 LB: > { %s1630_s16 = sadd.s32 4294967295, %s2212_s15   ;;  %s2289_s17 = sadd.s32 1, %s2212_s15   ;;  %s2212_s15 = sphi %s2276_s15, %s2656_s15   ;;  %s2208_s14 = sphi %s2274_s14, %s2655_s14   ;;  %s2204_s13 = sphi %s2272_s13, %s2654_s13  }
   0x3   : > { %s24_s18 = ssub.s32 %s2212_s15, %s2289_s17  ;;  %s27_s19 = sadd.s32 1, %s2208_s14 }
   0x4   : > { %p25_p0 = scmp.eq.s32.totalorder %s24_s18, 0  ;;  %p34_p1 = scmp.ne.s32.totalorder %s2208_s14, %s2204_s13 }
   0x5   : > { %p35_p2 = scmp.eq.s32.totalorder %s2212_s15, 0  ;;  %p1633_p4 = scmp.ge.s32.totalorder %s2212_s15, 2 }
   0x6   : > { %s2298_s20 = scalar_select %p25_p0, %s2208_s14, %s27_s19  }
   0x7   : > { %p36_p3 = por %p35_p2, %p34_p1  ;;  %302 = sbr.rel (%p1633_p4) target bundleno = 18 (0x12), region = 52 }
   0xc   : > { %305 = sbr.rel (!%p36_p3) target bundleno = 18 (0x12), region = 56  ;;  %s307_s21 = sand.u32 (%p36_p3), 1, %s2208_s14  }
   0xd   : > { %s1635_s22 = sshll.u32 (%p36_p3), %s2212_s15, 2  ;;  %s1634_s23 = sshll.u32 (%p36_p3), %s307_s21, 3 }
   0xe   : > { %s311_s26 = scalar_lea.vmem (%p36_p3), %s2643_s0, %s1635_s22  ;;  %s309_s27 = scalar_lea.vmem (%p36_p3), [#allocation2], %s1634_s23 }
   0xf   : > { %v328_v0 = vld [vmem:[%s311_s26] sm:$0xf] (%p36_p3)  ;;  %v330_v1 = vld [vmem:[%s311_s26 + $0x8] sm:$0xf] (%p36_p3) }
  0x10   : > { %329 = vst [vmem:[%s309_s27] sm:$0xf] (%p36_p3), %v328_v0 }
  0x11   : > { %331 = vst [vmem:[%s309_s27 + $0x4] sm:$0xf] %v330_v1 }
  0x12 PF: > { %p1636_p5 = scmp.ge.s32.totalorder %s2212_s15, 1  ;;  %p358_p6 = scmp.lt.s32.totalorder %s2212_s15, 3 }
  0x14   : > { %p359_p7 = pnand %p1636_p5, %p358_p6 }
  0x15   : > { %s365_s28 = sand.u32 (!%p359_p7), 1, %s2204_s13   ;;  %s2214_s25 = smov (!%p359_p7), 92  }
  0x16   : > { %362 = sbr.rel (%p359_p7) target bundleno = 937 (0x3a9), region = 97  ;;  %s1637_s11 = sshll.u32 (!%p359_p7), %s365_s28, 3 }
  0x17   : > { %s367_s22 = scalar_lea.vmem (!%p359_p7), [#allocation2], %s1637_s11  ;;  %s2215_s23 = smov (!%p359_p7), 108  }
  0x18   : > { %s2216_s13 = smov (!%p359_p7), 116   ;;  %p400_p8 = scmp.lt.s32.totalorder (!%p359_p7), %s1630_s16, 1 }
  0x1b   : > { %v2057_v2 = vld [vmem:[%s2645_s2 + $0x38] sm:$0xff]  ;;  %v2056_v4 = vld [vmem:[%s2645_s2 + $0x30] sm:$0xff]  ;;  %v2318_v5 = vld [vmem:[%s367_s22] sm:$0xff]  ;;  %vm490_vm0 = vcmask 130048   ;;  %vm822_vm5 = vcmask 293888   ;;  %vm1192_vm8 = vcmask 162816  }
  0x1c   : > { %v2073_v3 = vld [vmem:[%s2646_s3 + $0x38] sm:$0xff]  ;;  %628 = vmatpush.bf16.msra.mxu1 %v2057_v2  ;;  %v2072_v6 = vld [vmem:[%s2646_s3 + $0x30] sm:$0xff]  ;;  %v2048_v7 = vld [vmem:[%s2644_s1] sm:$0xff]  ;;  %504 = vmatpush.bf16.msra.mxu0 %v2318_v5  ;;  %vm1560_vm11 = vcmask 97280   ;;  %s2658_s16 = smov (!%p400_p8, %s1630_s16), 1  ;;  %vm1575_vm12 = vcmask 0  }
  0x1d   : > { %752 = vmatpush.bf16.msra.mxu3 %v2073_v3  ;;  %v2055_v8 = vld [vmem:[%s2645_s2 + $0x28] sm:$0xff]  ;;  %v2054_v10 = vld [vmem:[%s2645_s2 + $0x20] sm:$0xff]  ;;  %v2053_v13 = vld [vmem:[%s2645_s2 + $0x18] sm:$0xff]  ;;  %s402_s18 = scalar_lea.vmem %s2653_s10, %s2658_s16 }
  0x1e   : > { %v2071_v9 = vld [vmem:[%s2646_s3 + $0x28] sm:$0xff]  ;;  %v2070_v11 = vld [vmem:[%s2646_s3 + $0x20] sm:$0xff]  ;;  %v2065_v14 = vld [vmem:[%s2645_s2 + $0x78] sm:$0xff] }
  0x1f   : > { %1650 = vmatmul.msk.bf16.vlgmr.msra.gmra.mxu0 %vm490_vm0, %v2048_v7  ;;  %v2049_v12 = vld [vmem:[%s2644_s1 + $0x8] sm:$0xff]  ;;  %v2069_v15 = vld [vmem:[%s2646_s3 + $0x18] sm:$0xff]  ;;  %642 = vmatpush.bf16.msra.mxu2 %v2065_v14  ;;  %v2052_v17 = vld [vmem:[%s2645_s2 + $0x10] sm:$0xff] }
  0x20   : > { %629 = vmatpush.bf16.msra.mxu1 %v2056_v4  ;;  %v2081_v16 = vld [vmem:[%s2646_s3 + $0x78] sm:$0xff]  ;;  %v2064_v18 = vld [vmem:[%s2645_s2 + $0x70] sm:$0xff]  ;;  %v2051_v21 = vld [vmem:[%s2645_s2 + $0x8] sm:$0xff] }
  0x21   : > { %753 = vmatpush.bf16.msra.mxu3 %v2072_v6  ;;  %766 = vmatpush.bf16.msrb.mxu0 %v2081_v16  ;;  %v2068_v19 = vld [vmem:[%s2646_s3 + $0x10] sm:$0xff]  ;;  %v2063_v22 = vld [vmem:[%s2645_s2 + $0x68] sm:$0xff]  ;;  %v2050_v25 = vld [vmem:[%s2645_s2] sm:$0xff] }
  0x22   : > { %v2080_v20 = vld [vmem:[%s2646_s3 + $0x70] sm:$0xff]  ;;  %v2067_v23 = vld [vmem:[%s2646_s3 + $0x8] sm:$0xff]  ;;  %v2062_v26 = vld [vmem:[%s2645_s2 + $0x60] sm:$0xff] }
  0x23   : > { %643 = vmatpush.bf16.msra.mxu2 %v2064_v18  ;;  %v2079_v24 = vld [vmem:[%s2646_s3 + $0x68] sm:$0xff]  ;;  %v2066_v27 = vld [vmem:[%s2646_s3] sm:$0xff]  ;;  %v2061_v29 = vld [vmem:[%s2645_s2 + $0x58] sm:$0xff] }
  0x24   : > { %630 = vmatpush.bf16.msra.mxu1 %v2055_v8  ;;  %v2078_v28 = vld [vmem:[%s2646_s3 + $0x60] sm:$0xff]  ;;  %v2077_v30 = vld [vmem:[%s2646_s3 + $0x58] sm:$0xff]  ;;  %v2060_v31 = vld [vmem:[%s2645_s2 + $0x50] sm:$0xff] }
  0x25   : > { %754 = vmatpush.bf16.msra.mxu3 %v2071_v9  ;;  %767 = vmatpush.bf16.msrb.mxu0 %v2080_v20  ;;  %v2076_v32 = vld [vmem:[%s2646_s3 + $0x50] sm:$0xff]  ;;  %v2059_v33 = vld [vmem:[%s2645_s2 + $0x48] sm:$0xff]  ;;  %v2058_v35 = vld [vmem:[%s2645_s2 + $0x40] sm:$0xff] }
  0x26   : > { %v2075_v34 = vld [vmem:[%s2646_s3 + $0x48] sm:$0xff]  ;;  %v2074_v36 = vld [vmem:[%s2646_s3 + $0x40] sm:$0xff]  ;;  %v2091_v38 = vld [vmem:[%s2648_s5 + $0x38] sm:$0xff] }
  0x27   : > { %644 = vmatpush.bf16.msra.mxu2 %v2063_v22  ;;  %v2107_v39 = vld [vmem:[%s2649_s6 + $0x38] sm:$0xff]  ;;  %v2090_v41 = vld [vmem:[%s2648_s5 + $0x30] sm:$0xff]  ;;  %v2089_v43 = vld [vmem:[%s2648_s5 + $0x28] sm:$0xff] }
  0x28   : > { %631 = vmatpush.bf16.msra.mxu1 %v2054_v10  ;;  %v2099_v40 = vld [vmem:[%s2648_s5 + $0x78] sm:$0xff]  ;;  %v2106_v42 = vld [vmem:[%s2649_s6 + $0x30] sm:$0xff]  ;;  %v2105_v44 = vld [vmem:[%s2649_s6 + $0x28] sm:$0xff] }
  0x29   : > { %755 = vmatpush.bf16.msra.mxu3 %v2070_v11  ;;  %768 = vmatpush.bf16.msrb.mxu0 %v2079_v24  ;;  %v2115_v50 = vld [vmem:[%s2649_s6 + $0x78] sm:$0xff]  ;;  %v2083_v58 = vld [vmem:[%s2647_s4] sm:$0xff]  ;;  %v2098_v61 = vld [vmem:[%s2648_s5 + $0x70] sm:$0xff] }
  0x2a   : > { %v2088_v60 = vld [vmem:[%s2648_s5 + $0x20] sm:$0xff]  ;;  %v2114_v63 = vld [vmem:[%s2649_s6 + $0x70] sm:$0xff]  ;;  %v2087_v0 = vld [vmem:[%s2648_s5 + $0x18] sm:$0xff] }
  0x2b   : > { %645 = vmatpush.bf16.msra.mxu2 %v2062_v26  ;;  %v2104_v62 = vld [vmem:[%s2649_s6 + $0x20] sm:$0xff]  ;;  %v2097_v1 = vld [vmem:[%s2648_s5 + $0x68] sm:$0xff]  ;;  %v2103_v2 = vld [vmem:[%s2649_s6 + $0x18] sm:$0xff] }
  0x2c   : > { %632 = vmatpush.bf16.msra.mxu1 %v2053_v13  ;;  %v2113_v3 = vld [vmem:[%s2649_s6 + $0x68] sm:$0xff]  ;;  %v2086_v4 = vld [vmem:[%s2648_s5 + $0x10] sm:$0xff]  ;;  %v2096_v6 = vld [vmem:[%s2648_s5 + $0x60] sm:$0xff] }
  0x2d   : > { %756 = vmatpush.bf16.msra.mxu3 %v2069_v15  ;;  %769 = vmatpush.bf16.msrb.mxu0 %v2078_v28  ;;  %v2102_v7 = vld [vmem:[%s2649_s6 + $0x10] sm:$0xff]  ;;  %v2112_v8 = vld [vmem:[%s2649_s6 + $0x60] sm:$0xff]  ;;  %v2085_v9 = vld [vmem:[%s2648_s5 + $0x8] sm:$0xff] }
  0x2e   : > { %v2095_v10 = vld [vmem:[%s2648_s5 + $0x58] sm:$0xff]  ;;  %v2101_v11 = vld [vmem:[%s2649_s6 + $0x8] sm:$0xff]  ;;  %v2084_v13 = vld [vmem:[%s2648_s5] sm:$0xff] }
  0x2f   : > { %1651 = vmatmul.msk.bf16.gmra.mxu0 %vm490_vm0, %v2049_v12  ;;  %646 = vmatpush.bf16.msra.mxu2 %v2061_v29  ;;  %v2111_v12 = vld [vmem:[%s2649_s6 + $0x58] sm:$0xff]  ;;  %v2094_v14 = vld [vmem:[%s2648_s5 + $0x50] sm:$0xff]  ;;  %v2100_v15 = vld [vmem:[%s2649_s6] sm:$0xff] }
  0x30   : > { %633 = vmatpush.bf16.msra.mxu1 %v2052_v17  ;;  %v2110_v16 = vld [vmem:[%s2649_s6 + $0x50] sm:$0xff]  ;;  %v2093_v17 = vld [vmem:[%s2648_s5 + $0x48] sm:$0xff]  ;;  %v2108_v20 = vld [vmem:[%s2649_s6 + $0x40] sm:$0xff] }
  0x31   : > { %757 = vmatpush.bf16.msra.mxu3 %v2068_v19  ;;  %770 = vmatpush.bf16.msrb.mxu0 %v2077_v30  ;;  %v2109_v18 = vld [vmem:[%s2649_s6 + $0x48] sm:$0xff]  ;;  %v2092_v19 = vld [vmem:[%s2648_s5 + $0x40] sm:$0xff] }
  0x33   : > { %647 = vmatpush.bf16.msra.mxu2 %v2060_v31 }
  0x34   : > { %634 = vmatpush.bf16.msra.mxu1 %v2051_v21 }
  0x35   : > { %758 = vmatpush.bf16.msra.mxu3 %v2067_v23  ;;  %771 = vmatpush.bf16.msrb.mxu0 %v2076_v32 }
  0x37   : > { %648 = vmatpush.bf16.msra.mxu2 %v2059_v33 }
  0x38   : > { %635 = vmatpush.bf16.msra.mxu1 %v2050_v25 }
  0x39   : > { %759 = vmatpush.bf16.msra.mxu3 %v2066_v27  ;;  %772 = vmatpush.bf16.msrb.mxu0 %v2075_v34  ;;  %v2124_v34 = vld [vmem:[%s2651_s8 + $0x38] sm:$0xff] }
  0x3b   : > { %649 = vmatpush.bf16.msra.mxu2 %v2058_v35  ;;  %v2140_v35 = vld [vmem:[%s2652_s9 + $0x38] sm:$0xff] }
  0x3c   : > { %918 = vmatpush.bf16.msrb.mxu1 %v2318_v5 }
  0x3d   : > { %773 = vmatpush.bf16.msrb.mxu0 %v2074_v36  ;;  %1036 = vmatpush.bf16.msrb.mxu3 %v2099_v40  ;;  %v2139_v40 = vld [vmem:[%s2652_s9 + $0x30] sm:$0xff] }
  0x3f   : > { %1023 = vmatpush.bf16.msrb.mxu2 %v2091_v38 }
  0x41   : > { %1145 = vmatpush.bf16.msra.mxu0 %v2107_v39  ;;  %1037 = vmatpush.bf16.msrb.mxu3 %v2098_v61  ;;  %v2123_v39 = vld [vmem:[%s2651_s8 + $0x30] sm:$0xff] }
  0x43   : > { %1024 = vmatpush.bf16.msrb.mxu2 %v2090_v41 }
  0x45   : > { %1146 = vmatpush.bf16.msra.mxu0 %v2106_v42  ;;  %1038 = vmatpush.bf16.msrb.mxu3 %v2097_v1 }
  0x47   : > { %1025 = vmatpush.bf16.msrb.mxu2 %v2089_v43  ;;  %v2116_v43 = vld [vmem:[%s2650_s7] sm:$0xff] }
  0x49   : > { %1147 = vmatpush.bf16.msra.mxu0 %v2105_v44  ;;  %1039 = vmatpush.bf16.msrb.mxu3 %v2096_v6  ;;  %v2138_v6 = vld [vmem:[%s2652_s9 + $0x28] sm:$0xff] }
  0x4b   : > { %1026 = vmatpush.bf16.msrb.mxu2 %v2088_v60 }
  0x4d   : > { %1148 = vmatpush.bf16.msra.mxu0 %v2104_v62  ;;  %1040 = vmatpush.bf16.msrb.mxu3 %v2095_v10  ;;  %v2137_v10 = vld [vmem:[%s2652_s9 + $0x20] sm:$0xff] }
  0x4f   : > { %1027 = vmatpush.bf16.msrb.mxu2 %v2087_v0 }
  0x51   : > { %1149 = vmatpush.bf16.msra.mxu0 %v2103_v2  ;;  %1041 = vmatpush.bf16.msrb.mxu3 %v2094_v14  ;;  %v2136_v14 = vld [vmem:[%s2652_s9 + $0x18] sm:$0xff] }
  0x53   : > { %1028 = vmatpush.bf16.msrb.mxu2 %v2086_v4  ;;  %v2132_v4 = vld [vmem:[%s2651_s8 + $0x78] sm:$0xff] }
  0x55   : > { %1150 = vmatpush.bf16.msra.mxu0 %v2102_v7  ;;  %1042 = vmatpush.bf16.msrb.mxu3 %v2093_v17  ;;  %v2148_v7 = vld [vmem:[%s2652_s9 + $0x78] sm:$0xff]  ;;  %v2129_v17 = vld [vmem:[%s2651_s8 + $0x60] sm:$0xff] }
  0x57   : > { %1029 = vmatpush.bf16.msrb.mxu2 %v2085_v9  ;;  %v2131_v9 = vld [vmem:[%s2651_s8 + $0x70] sm:$0xff] }
  0x59   : > { %1151 = vmatpush.bf16.msra.mxu0 %v2101_v11  ;;  %1043 = vmatpush.bf16.msrb.mxu3 %v2092_v19  ;;  %v2147_v11 = vld [vmem:[%s2652_s9 + $0x70] sm:$0xff]  ;;  %v2145_v19 = vld [vmem:[%s2652_s9 + $0x60] sm:$0xff] }
  0x5b   : > { %1030 = vmatpush.bf16.msrb.mxu2 %v2084_v13  ;;  %v2130_v13 = vld [vmem:[%s2651_s8 + $0x68] sm:$0xff] }
  0x5d   : > { %1152 = vmatpush.bf16.msra.mxu0 %v2100_v15  ;;  %v2146_v15 = vld [vmem:[%s2652_s9 + $0x68] sm:$0xff] }
  0x9c   : > { %v506_v37 = vpop.f32.mrf.mxu0 }
  0x9d   : > { %v516_v45 = vpack.c.bf16 %v506_v37, %v506_v37 }
  0x9f   : > { %v522_v48 = vunpack.c.l.b16 %v516_v45 }
  0xa4   : > { %v508_v46 = vpop.f32.mrf.mxu0 }
  0xa5   : > { %v517_v47 = vpack.c.bf16 %v508_v46, %v508_v46 }
  0xa7   : > { %v523_v49 = vunpack.c.l.b16 %v517_v47 }
  0xa9   : > { %v524_v51 = vpack.c.b16 %v523_v49, %v522_v48 }
  0xab   : > { %636 = vmatmul.bf16.vlgmr.msra.gmra.mxu1 %v524_v51  ;;  %760 = vmatmul.bf16.vlgmr.msra.gmra.mxu3 %v524_v51 }
  0xac   : > { %v511_v52 = vpop.f32.mrf.mxu0  ;;  %1158 = vmatpush.bf16.msra.mxu1 %v2115_v50  ;;  %1391 = vmatpush.bf16.msra.mxu3 %v2124_v34 }
  0xad   : > { %v518_v53 = vpack.c.bf16 %v511_v52, %v511_v52 }
  0xaf   : > { %v528_v55 = vunpack.c.l.b16 %v518_v53 }
  0xb0   : > { %1159 = vmatpush.bf16.msra.mxu1 %v2114_v63  ;;  %1392 = vmatpush.bf16.msra.mxu3 %v2123_v39 }
  0xb4   : > { %v513_v54 = vpop.f32.mrf.mxu0  ;;  %1160 = vmatpush.bf16.msra.mxu1 %v2113_v3  ;;  %v2122_v3 = vld [vmem:[%s2651_s8 + $0x28] sm:$0xff] }
  0xb5   : > { %v519_v56 = vpack.c.bf16 %v513_v54, %v513_v54  ;;  %1393 = vmatpush.bf16.msra.mxu3 %v2122_v3 }
  0xb7   : > { %v529_v57 = vunpack.c.l.b16 %v519_v56 }
  0xb8   : > { %1161 = vmatpush.bf16.msra.mxu1 %v2112_v8  ;;  %v2121_v8 = vld [vmem:[%s2651_s8 + $0x20] sm:$0xff] }
  0xb9   : > { %v530_v59 = vpack.c.b16 %v529_v57, %v528_v55  ;;  %1394 = vmatpush.bf16.msra.mxu3 %v2121_v8 }
  0xbb   : > { %650 = vmatmul.bf16.vlgmr.msra.gmra.mxu2 %v530_v59  ;;  %774 = vmatmul.bf16.vlgmr.msrb.gmra.mxu0 %v530_v59 }
  0xbc   : > { %1784 = vmatmul.msk.bf16.vlgmr.msrb.gmra.mxu1 %vm490_vm0, %v2083_v58  ;;  %1286 = vmatpush.bf16.msra.mxu2 %v2318_v5 }
  0xbd   : > { %1162 = vmatpush.bf16.msra.mxu1 %v2111_v12  ;;  %1404 = vmatpush.bf16.msrb.mxu0 %v2132_v4  ;;  %v2120_v12 = vld [vmem:[%s2651_s8 + $0x18] sm:$0xff] }
  0xbe   : > { %1395 = vmatpush.bf16.msra.mxu3 %v2120_v12 }
  0xc1   : > { %1163 = vmatpush.bf16.msra.mxu1 %v2110_v16  ;;  %1405 = vmatpush.bf16.msrb.mxu0 %v2131_v9  ;;  %v2119_v16 = vld [vmem:[%s2651_s8 + $0x10] sm:$0xff] }
  0xc2   : > { %1396 = vmatpush.bf16.msra.mxu3 %v2119_v16 }
  0xc5   : > { %1164 = vmatpush.bf16.msra.mxu1 %v2109_v18  ;;  %1406 = vmatpush.bf16.msrb.mxu0 %v2130_v13  ;;  %v2135_v18 = vld [vmem:[%s2652_s9 + $0x10] sm:$0xff] }
  0xc9   : > { %1165 = vmatpush.bf16.msra.mxu1 %v2108_v20  ;;  %1407 = vmatpush.bf16.msrb.mxu0 %v2129_v17  ;;  %v2118_v20 = vld [vmem:[%s2651_s8 + $0x8] sm:$0xff] }
  0xca   : > { %1397 = vmatpush.bf16.msra.mxu3 %v2118_v20 }
  0xcd   : > { %1513 = vmatpush.bf16.msrb.mxu1 %v2140_v35 }
  0xd1   : > { %1514 = vmatpush.bf16.msrb.mxu1 %v2139_v40 }
  0xd5   : > { %1515 = vmatpush.bf16.msrb.mxu1 %v2138_v6 }
  0xd9   : > { %1516 = vmatpush.bf16.msrb.mxu1 %v2137_v10 }
  0xdd   : > { %1517 = vmatpush.bf16.msrb.mxu1 %v2136_v14 }
  0xe1   : > { %1518 = vmatpush.bf16.msrb.mxu1 %v2135_v18 }
 0x128   : > { %v637_v5 = vpop.f32.mrf.mxu1 }
 0x12e   : > { %v761_v24 = vpop.f32.mrf.mxu3 }
 0x130   : > { %v639_v21 = vpop.f32.mrf.mxu1 }
 0x136   : > { %v763_v37 = vpop.f32.mrf.mxu3 }
 0x138   : > { %v775_v22 = vpop.f32.mrf.mxu0 }
 0x139   : > { %v920_v23 = vpop.f32.mrf.mxu1  ;;  %v776_v26 = vadd.f32 %v775_v22, %v761_v24  ;;  %v2144_v22 = vld [vmem:[%s2652_s9 + $0x58] sm:$0xff]  ;;  %v2127_v24 = vld [vmem:[%s2651_s8 + $0x50] sm:$0xff] }
 0x13a   : > { %v925_v25 = vpack.c.bf16 %v920_v23, %v920_v23  ;;  %v2117_v23 = vld [vmem:[%s2651_s8] sm:$0xff] }
 0x13b   : > { %v782_v29 = vmul.f32 %v776_v26, %v776_v26  ;;  %v2143_v26 = vld [vmem:[%s2652_s9 + $0x50] sm:$0xff]  ;;  %1398 = vmatpush.bf16.msra.mxu3 %v2117_v23 }
 0x13c   : > { %1031 = vmatmul.bf16.vlgmr.msrb.gmra.mxu2 %v925_v25  ;;  %1153 = vmatmul.bf16.vlgmr.msra.gmra.mxu0 %v925_v25  ;;  %v2133_v25 = vld [vmem:[%s2652_s9] sm:$0xff] }
 0x13d   : > { %1526 = vmatpush.bf16.msrb.mxu2 %v2148_v7 }
 0x13e   : > { %v651_v27 = vpop.f32.mrf.mxu2 }
 0x13f   : > { %v652_v28 = vadd.f32 %v651_v27, %v637_v5  ;;  %v2128_v5 = vld [vmem:[%s2651_s8 + $0x58] sm:$0xff]  ;;  %v2126_v27 = vld [vmem:[%s2651_s8 + $0x48] sm:$0xff] }
 0x140   : > { %v777_v32 = vpop.f32.mrf.mxu0  ;;  %1408 = vmatpush.bf16.msrb.mxu0 %v2128_v5 }
 0x141   : > { %v780_v30 = vmul.f32 %v652_v28, %v652_v28  ;;  %v922_v31 = vpop.f32.mrf.mxu1  ;;  %v778_v38 = vadd.f32 %v777_v32, %v763_v37  ;;  %1527 = vmatpush.bf16.msrb.mxu2 %v2147_v11  ;;  %v2142_v28 = vld [vmem:[%s2652_s9 + $0x48] sm:$0xff] }
 0x142   : > { %v926_v33 = vpack.c.bf16 %v922_v31, %v922_v31 }
 0x143   : > { %v784_v36 = vadd.f32 %v782_v29, %v780_v30  ;;  %v783_v44 = vmul.f32 %v778_v38, %v778_v38  ;;  %v2125_v29 = vld [vmem:[%s2651_s8 + $0x40] sm:$0xff] }
 0x144   : > { %1044 = vmatmul.bf16.vlgmr.msrb.gmra.mxu3 %v926_v33  ;;  %1166 = vmatmul.bf16.vlgmr.msra.gmra.mxu1 %v926_v33  ;;  %v2141_v30 = vld [vmem:[%s2652_s9 + $0x40] sm:$0xff] }
 0x145   : > { %2182 = vrsqrt.f32 %v784_v36  ;;  %vm793_vm1 = vcmp.eq.f32.partialorder %v784_v36, inf  ;;  %v796_v57 = vand.u32 2147483648, %v784_v36  ;;  %vm795_vm2 = vcmp.eq.f32.partialorder %v784_v36, 0.0  ;;  %1528 = vmatpush.bf16.msrb.mxu2 %v2146_v15  ;;  %1409 = vmatpush.bf16.msrb.mxu0 %v2127_v24 }
 0x146   : > { %v653_v41 = vpop.f32.mrf.mxu2 }
 0x147   : > { %v654_v42 = vadd.f32 %v653_v41, %v639_v21  ;;  %v2134_v21 = vld [vmem:[%s2652_s9 + $0x8] sm:$0xff] }
 0x148   : > { %1519 = vmatpush.bf16.msrb.mxu1 %v2134_v21 }
 0x149   : > { %v781_v45 = vmul.f32 %v654_v42, %v654_v42  ;;  %1529 = vmatpush.bf16.msrb.mxu2 %v2145_v19  ;;  %1410 = vmatpush.bf16.msrb.mxu0 %v2126_v27 }
 0x14b   : > { %v2183_v46 = vpop.eup %2182  ;;  %v785_v47 = vadd.f32 %v783_v44, %v781_v45 }
 0x14c   : > { %1917 = vmatmul.msk.bf16.vlgmr.msra.gmra.mxu2 %vm490_vm0, %v2116_v43  ;;  %v787_v48 = vmul.f32 %v2183_v46, %v784_v36  ;;  %1520 = vmatpush.bf16.msrb.mxu1 %v2133_v25 }
 0x14d   : > { %2184 = vrsqrt.f32 %v785_v47  ;;  %vm805_vm3 = vcmp.eq.f32.partialorder %v785_v47, inf  ;;  %v808_v0 = vand.u32 2147483648, %v785_v47  ;;  %vm807_vm4 = vcmp.eq.f32.partialorder %v785_v47, 0.0  ;;  %1530 = vmatpush.bf16.msrb.mxu2 %v2144_v22  ;;  %1411 = vmatpush.bf16.msrb.mxu0 %v2125_v29 }
 0x14e   : > { %v788_v49 = vmul.f32 %v2183_v46, %v787_v48 }
 0x150   : > { %v789_v50 = vmul.f32 0.5, %v788_v49 }
 0x151   : > { %1531 = vmatpush.bf16.msrb.mxu2 %v2143_v26 }
 0x152   : > { %v790_v51 = vsub.f32 1.5, %v789_v50 }
 0x153   : > { %v2185_v52 = vpop.eup %2184 }
 0x154   : > { %v791_v53 = vmul.f32 %v2183_v46, %v790_v51  ;;  %v799_v54 = vmul.f32 %v2185_v52, %v785_v47 }
 0x155   : > { %1532 = vmatpush.bf16.msrb.mxu2 %v2142_v28 }
 0x156   : > { %v792_v55 = vmul.f32 %v791_v53, %v784_v36  ;;  %v800_v56 = vmul.f32 %v2185_v52, %v799_v54 }
 0x158   : > { %v794_v58 = vsel %vm793_vm1, %v784_v36, %v792_v55  ;;  %v801_v59 = vmul.f32 0.5, %v800_v56 }
 0x159   : > { %v2534_v60 = vsel %vm795_vm2, %v796_v57, %v794_v58  ;;  %1533 = vmatpush.bf16.msrb.mxu2 %v2141_v30 }
 0x15a   : > { %812 = vrot.lane.b32.xlu0 %v2534_v60, %s2214_s25  ;;  %v802_v61 = vsub.f32 1.5, %v801_v59 }
 0x15c   : > { %v803_v62 = vmul.f32 %v2185_v52, %v802_v61 }
 0x15e   : > { %v804_v63 = vmul.f32 %v803_v62, %v785_v47 }
 0x160   : > { %v806_v1 = vsel %vm805_vm3, %v785_v47, %v804_v63 }
 0x161   : > { %v2537_v2 = vsel %vm807_vm4, %v808_v0, %v806_v1 }
 0x162   : > { %814 = vrot.lane.b32.xlu0 %v2537_v2, %s2214_s25 }
 0x1b9   : > { %v1154_v31 = vpop.f32.mrf.mxu0 }
 0x1bf   : > { %v1032_v32 = vpop.f32.mrf.mxu2 }
 0x1c1   : > { %v1156_v33 = vpop.f32.mrf.mxu0  ;;  %v1167_v34 = vpop.f32.mrf.mxu1 }
 0x1c2   : > { %v1168_v35 = vadd.f32 %v1167_v34, %v1154_v31 }
 0x1c4   : > { %v1172_v40 = vmul.f32 %v1168_v35, %v1168_v35 }
 0x1c7   : > { %v1034_v36 = vpop.f32.mrf.mxu2  ;;  %v1045_v37 = vpop.f32.mrf.mxu3 }
 0x1c8   : > { %v1046_v38 = vadd.f32 %v1045_v37, %v1032_v32 }
 0x1c9   : > { %v1169_v39 = vpop.f32.mrf.mxu1 }
 0x1ca   : > { %v1171_v41 = vmul.f32 %v1046_v38, %v1046_v38 }
 0x1cc   : > { %v1173_v42 = vadd.f32 %v1172_v40, %v1171_v41  ;;  %v813_v43 = vpop.permute.xlu0 %812 }
 0x1cd   : > { %v818_v47 = vsub.f32 %v2534_v60, %v813_v43 }
 0x1ce   : > { %2186 = vrsqrt.f32 %v1173_v42  ;;  %vm1181_vm6 = vcmp.eq.f32.partialorder %v1173_v42, inf  ;;  %v1184_v0 = vand.u32 2147483648, %v1173_v42  ;;  %vm1183_vm7 = vcmp.eq.f32.partialorder %v1173_v42, 0.0 }
 0x1cf   : > { %v1047_v44 = vpop.f32.mrf.mxu3  ;;  %v1288_v45 = vpop.f32.mrf.mxu2  ;;  %v820_v50 = vmul.f32 %v818_v47, %v818_v47 }
 0x1d0   : > { %v1293_v46 = vpack.c.bf16 %v1288_v45, %v1288_v45 }
 0x1d1   : > { %v823_v57 = vsel %vm822_vm5, %v820_v50, 0.0 }
 0x1d2   : > { %1399 = vmatmul.bf16.vlgmr.msra.gmra.mxu3 %v1293_v46  ;;  %1521 = vmatmul.bf16.vlgmr.msrb.gmra.mxu1 %v1293_v46 }
 0x1d4   : > { %v2187_v48 = vpop.eup %2186  ;;  %v815_v49 = vpop.permute.xlu0 %814 }
 0x1d5   : > { %v819_v51 = vsub.f32 %v2537_v2, %v815_v49  ;;  %v1175_v52 = vmul.f32 %v2187_v48, %v1173_v42 }
 0x1d7   : > { %v821_v53 = vmul.f32 %v819_v51, %v819_v51  ;;  %v1290_v54 = vpop.f32.mrf.mxu2  ;;  %v1176_v55 = vmul.f32 %v2187_v48, %v1175_v52 }
 0x1d8   : > { %v1294_v56 = vpack.c.bf16 %v1290_v54, %v1290_v54 }
 0x1d9   : > { %v824_v58 = vsel %vm822_vm5, %v821_v53, 0.0  ;;  %v1177_v59 = vmul.f32 0.5, %v1176_v55 }
 0x1da   : > { %1412 = vmatmul.bf16.vlgmr.msrb.gmra.mxu0 %v1294_v56  ;;  %1534 = vmatmul.bf16.vlgmr.msrb.gmra.mxu2 %v1294_v56  ;;  %v825_v61 = vadd.f32 %v824_v58, %v823_v57 }
 0x1db   : > { %v1178_v60 = vsub.f32 1.5, %v1177_v59 }
 0x1dc   : > { %826 = vadd.xlane.f32.xlu2 %v825_v61 }
 0x1dd   : > { %v1179_v62 = vmul.f32 %v2187_v48, %v1178_v60 }
 0x1df   : > { %v1180_v63 = vmul.f32 %v1179_v62, %v1173_v42 }
 0x1e1   : > { %v1182_v1 = vsel %vm1181_vm6, %v1173_v42, %v1180_v63 }
 0x1e2   : > { %v1185_v2 = vsel %vm1183_vm7, %v1184_v0, %v1182_v1 }
 0x1e3   : > { %1187 = vrot.lane.b32.xlu1 %v1185_v2, %s2215_s23 }
 0x24f   : > { %v1522_v3 = vpop.f32.mrf.mxu1  ;;  %v827_v4 = vpop.xlane.xlu2 %826 }
 0x250   : > { %v828_v6 = vrot.slane %v827_v4, 4 }
 0x252   : > { %v829_v7 = vadd.f32 %v828_v6, %v827_v4 }
 0x254   : > { %v830_v8 = vrot.slane %v829_v7, 2 }
 0x255   : > { %v1188_v9 = vpop.permute.xlu1 %1187  ;;  %v1400_v10 = vpop.f32.mrf.mxu3 }
 0x256   : > { %v1190_v11 = vsub.f32 %v1185_v2, %v1188_v9  ;;  %v831_v12 = vadd.f32 %v830_v8, %v829_v7 }
 0x257   : > { %v1413_v13 = vpop.f32.mrf.mxu0  ;;  %v1524_v14 = vpop.f32.mrf.mxu1 }
 0x258   : > { %v1191_v15 = vmul.f32 %v1190_v11, %v1190_v11  ;;  %v832_v16 = vrot.slane %v831_v12, 1  ;;  %v1414_v19 = vadd.f32 %v1413_v13, %v1400_v10 }
 0x25a   : > { %v1193_v17 = vsel %vm1192_vm8, %v1191_v15, 0.0  ;;  %v833_v18 = vadd.f32 %v832_v16, %v831_v12  ;;  %v1539_v23 = vmul.f32 %v1414_v19, %v1414_v19 }
 0x25b   : > { %1194 = vadd.xlane.f32.xlu2 %v1193_v17 }
 0x25c   : > { %2149 = vpush %v833_v18 }
 0x25d   : > { %v1402_v20 = vpop.f32.mrf.mxu3  ;;  %v1535_v5 = vpop.f32.mrf.mxu2 }
 0x25e   : > { %v1536_v21 = vadd.f32 %v1535_v5, %v1522_v3 }
 0x25f   : > { %v1415_v22 = vpop.f32.mrf.mxu0 }
 0x260   : > { %v1540_v24 = vmul.f32 %v1536_v21, %v1536_v21 }
 0x262   : > { %v1541_v25 = vadd.f32 %v1540_v24, %v1539_v23 }
 0x264   : > { %2188 = vrsqrt.f32 %v1541_v25  ;;  %vm1549_vm9 = vcmp.eq.f32.partialorder %v1541_v25, inf  ;;  %v1552_v34 = vand.u32 2147483648, %v1541_v25  ;;  %vm1551_vm10 = vcmp.eq.f32.partialorder %v1541_v25, 0.0 }
 0x265   : > { %v1537_v26 = vpop.f32.mrf.mxu2 }
 0x26a   : > { %v2189_v27 = vpop.eup %2188 }
 0x26b   : > { %v1543_v28 = vmul.f32 %v2189_v27, %v1541_v25 }
 0x26d   : > { %v1544_v29 = vmul.f32 %v2189_v27, %v1543_v28 }
 0x26f   : > { %v1545_v30 = vmul.f32 0.5, %v1544_v29 }
 0x271   : > { %v1546_v31 = vsub.f32 1.5, %v1545_v30 }
 0x273   : > { %v1547_v32 = vmul.f32 %v2189_v27, %v1546_v31 }
 0x275   : > { %v1548_v33 = vmul.f32 %v1547_v32, %v1541_v25 }
 0x277   : > { %v1550_v35 = vsel %vm1549_vm9, %v1541_v25, %v1548_v33 }
 0x278   : > { %v1553_v36 = vsel %vm1551_vm10, %v1552_v34, %v1550_v35 }
 0x279   : > { %1555 = vrot.lane.b32.xlu1 %v1553_v36, %s2216_s13 }
 0x28d   : > { %s2150_s24 = spop %2149 }
 0x28e   : > { %s835_s27 = smul.f32 0.00048828125, %s2150_s24 }
 0x2ce   : > { %v1195_v37 = vpop.xlane.xlu2 %1194 }
 0x2cf   : > { %v1196_v38 = vrot.slane %v1195_v37, 4 }
 0x2d1   : > { %v1197_v39 = vadd.f32 %v1196_v38, %v1195_v37 }
 0x2d3   : > { %v1198_v40 = vrot.slane %v1197_v39, 2 }
 0x2d5   : > { %v1199_v41 = vadd.f32 %v1198_v40, %v1197_v39 }
 0x2d7   : > { %v1200_v42 = vrot.slane %v1199_v41, 1 }
 0x2d9   : > { %v1201_v43 = vadd.f32 %v1200_v42, %v1199_v41 }
 0x2db   : > { %2151 = vpush %v1201_v43 }
 0x2eb   : > { %v1556_v44 = vpop.permute.xlu1 %1555 }
 0x2ec   : > { %v1558_v45 = vsub.f32 %v1553_v36, %v1556_v44 }
 0x2ee   : > { %v1559_v46 = vmul.f32 %v1558_v45, %v1558_v45 }
 0x2f0   : > { %v1561_v47 = vsel %vm1560_vm11, %v1559_v46, 0.0 }
 0x2f1   : > { %1562 = vadd.xlane.f32.xlu0 %v1561_v47 }
 0x30c   : > { %s2152_s25 = spop %2151 }
 0x30d   : > { %s1203_s26 = smul.f32 0.001953125, %s2152_s25 }
 0x30f   : > { %s1204_s29 = sadd.f32 %s1203_s26, %s835_s27 }
 0x364   : > { %v1563_v48 = vpop.xlane.xlu0 %1562 }
 0x365   : > { %v1564_v49 = vrot.slane %v1563_v48, 4 }
 0x367   : > { %v1565_v50 = vadd.f32 %v1564_v49, %v1563_v48 }
 0x369   : > { %v1566_v51 = vrot.slane %v1565_v50, 2 }
 0x36b   : > { %v1567_v52 = vadd.f32 %v1566_v51, %v1565_v50 }
 0x36d   : > { %v1568_v53 = vrot.slane %v1567_v52, 1 }
 0x36f   : > { %v1569_v54 = vadd.f32 %v1568_v53, %v1567_v52 }
 0x371   : > { %2153 = vpush %v1569_v54 }
 0x3a2   : > { %s2154_s28 = spop %2153 }
 0x3a3   : > { %s1571_s30 = smul.f32 0.0078125, %s2154_s28 }
 0x3a5   : > { %s1572_s19 = sadd.f32 %s1571_s30, %s1204_s29 }
 0x3a7   : > { %v1573_v55 = vstv %s1572_s19 }
 0x3a8   : > { %1576 = vst.msk [vmem:[%s402_s18] sm:$0x1] %vm1575_vm12, %v1573_v55 }
 0x3a9 PF: > { %p17_p9 = scmp.ge.s32.totalorder %s2289_s17, 4   ;;  %s2654_s13 = smov %s2208_s14 }
 0x3aa   : > { %s2655_s14 = smov %s2298_s20  ;;  %s2656_s15 = smov %s2289_s17 }
 0x3ab   :  { %19 = sbr.rel (!%p17_p9) target bundleno = 2 (0x2), region = 136 }

</bundles_post_ra>
